<compile_context>
chip_gen: v6e
topology: v6e:2x2x1
jax: 0.10.0
libtpu: 0.0.40
codegen_flags: <defaults>
</compile_context>

<pallas_src>
import math

import jax
import jax.numpy as jnp
from jax import lax
from jax.experimental import pallas as pl
from jax.experimental.pallas import tpu as pltpu

# y = x @ W.T with W stored [d_out, d_in]: contract dim 1 of x with dim 1 of W.
_TRANS_B = (((1,), (1,)), ((), ()))


def _pick_q_block(S, target=512):
    """Largest row tile <= target that tiles S exactly (multiple of 8)."""
    if S <= target:
        return S
    for cand in range(target - target % 8, 7, -8):
        if S % cand == 0:
            return cand
    return S


def _make_mha_kernel(num_heads: int, depth: int, has_mask: bool, store_attn: bool):
    scale = 1.0 / math.sqrt(depth)

    def kernel(*refs):
        (q_ref, k_ref, v_ref,
         wq_ref, wk_ref, wv_ref, wfc_ref,
         bq_ref, bk_ref, bv_ref, bfc_ref) = refs[:11]
        pos = 11
        mask_ref = None
        if has_mask:
            mask_ref = refs[pos]
            pos += 1
        out_ref = refs[pos]
        pos += 1
        attn_ref = None
        if store_attn:
            attn_ref = refs[pos]
            pos += 1
        ctx_ref = refs[pos]                      # VMEM scratch (Tq, d_model) f32

        q = q_ref[0]                             # (Tq, d_model) bf16
        k = k_ref[0]                             # (S,  d_model) bf16
        v = v_ref[0]                             # (S,  d_model) bf16

        # Q/K/V projections (PyTorch Linear: y = x @ W.T + b), bf16 operands on
        # the MXU with f32 accumulation; biases added in f32.
        qh = lax.dot_general(q, wq_ref[...], _TRANS_B,
                             preferred_element_type=jnp.float32) + bq_ref[...]
        kh = lax.dot_general(k, wk_ref[...], _TRANS_B,
                             preferred_element_type=jnp.float32) + bk_ref[...]
        vh = lax.dot_general(v, wv_ref[...], _TRANS_B,
                             preferred_element_type=jnp.float32) + bv_ref[...]

        # Fold the 1/sqrt(depth) logit scale into q once (d_model wide) instead
        # of per-head (S wide) multiplies on the logits.
        qh = (qh * scale).astype(jnp.bfloat16)
        kh = kh.astype(jnp.bfloat16)
        vh = vh.astype(jnp.bfloat16)

        neg_mask = None
        if has_mask:
            # (Tq, S) additive mask, computed ONCE and reused for every head.
            neg_mask = mask_ref[...] * (-1e9)

        # Per-head attention.  Head split = static lane slices; each head's
        # context goes straight into the (Tq, d_model) scratch so the head
        # merge is free and fc becomes one full-width matmul.
        # TODO(synk): for depth >= 128 turn this static unroll into a
        # lax.fori_loop over pl.ds(h*depth, depth) slices (or a grid axis) to
        # bound vreg live ranges; at depth=8 the slices are sub-lane anyway.
        for h in range(num_heads):
            lo = h * depth
            q_h = qh[:, lo:lo + depth]           # (Tq, depth) bf16
            k_h = kh[:, lo:lo + depth]
            v_h = vh[:, lo:lo + depth]

            # (already-scaled) logits = q_h @ k_h.T   (trans-B contraction)
            logits = lax.dot_general(q_h, k_h, _TRANS_B,
                                     preferred_element_type=jnp.float32)
            if has_mask:
                logits = logits + neg_mask

            # numerically-stable softmax in f32; reciprocal on the EUP slot.
            m = jnp.max(logits, axis=-1, keepdims=True)
            e = jnp.exp(logits - m)
            p = e * pl.reciprocal(jnp.sum(e, axis=-1, keepdims=True), approx=True)

            p_b = p.astype(jnp.bfloat16)
            if store_attn:
                attn_ref[0, h] = p_b.astype(attn_ref.dtype)

            ctx_ref[:, lo:lo + depth] = jnp.dot(
                p_b, v_h, preferred_element_type=jnp.float32)

        # Head merge + fc projection: a single (Tq, d_model) x (d_model, d_model)
        # trans-B matmul (full K = d_model MXU utilization), bias in f32.
        out = lax.dot_general(ctx_ref[...].astype(jnp.bfloat16), wfc_ref[...],
                              _TRANS_B, preferred_element_type=jnp.float32)
        out_ref[0] = (out + bfc_ref[...]).astype(out_ref.dtype)

    return kernel


def multi_head_attention(q, k, v, params, num_heads, mask=None, return_attn=True):
    """Forward pass of MultiHeadAttention.

    Returns (output, attention_weights) when return_attn=True, else output only
    (the PyTorch MultiHeadAttention module discards the attention weights).
    """
    B, S, d_model = q.shape
    assert d_model % num_heads == 0
    depth = d_model // num_heads

    # bf16 operands for the MXU (halves weight/activation HBM + VMEM traffic).
    qb = q.astype(jnp.bfloat16)
    kb = k.astype(jnp.bfloat16)
    vb = v.astype(jnp.bfloat16)
    wq = params["wq_w"].astype(jnp.bfloat16)
    wk = params["wk_w"].astype(jnp.bfloat16)
    wv = params["wv_w"].astype(jnp.bfloat16)
    wfc = params["fc_w"].astype(jnp.bfloat16)
    bq = params["wq_b"].reshape(1, d_model).astype(jnp.float32)
    bk = params["wk_b"].reshape(1, d_model).astype(jnp.float32)
    bv = params["wv_b"].reshape(1, d_model).astype(jnp.float32)
    bfc = params["fc_b"].reshape(1, d_model).astype(jnp.float32)

    has_mask = mask is not None
    q_block = _pick_q_block(S)
    n_qt = S // q_block
    grid = (B, n_qt)

    q_spec = pl.BlockSpec((1, q_block, d_model), lambda b, t: (b, t, 0))
    kv_spec = pl.BlockSpec((1, S, d_model), lambda b, t: (b, 0, 0))
    w_spec = pl.BlockSpec((d_model, d_model), lambda b, t: (0, 0))
    bias_spec = pl.BlockSpec((1, d_model), lambda b, t: (0, 0))

    in_specs = [q_spec, kv_spec, kv_spec,
                w_spec, w_spec, w_spec, w_spec,
                bias_spec, bias_spec, bias_spec, bias_spec]
    inputs = [qb, kb, vb, wq, wk, wv, wfc, bq, bk, bv, bfc]
    if has_mask:
        # Single (S, S) mask shared across batch & heads — no (B,H,S,S) HBM blow-up.
        mask2d = jnp.broadcast_to(mask, (S, S)).astype(jnp.float32)
        in_specs.append(pl.BlockSpec((q_block, S), lambda b, t: (t, 0)))
        inputs.append(mask2d)

    out_spec = pl.BlockSpec((1, q_block, d_model), lambda b, t: (b, t, 0))
    if return_attn:
        out_shape = (
            jax.ShapeDtypeStruct((B, S, d_model), jnp.float32),
            jax.ShapeDtypeStruct((B, num_heads, S, S), jnp.bfloat16),
        )
        out_specs = (
            out_spec,
            pl.BlockSpec((1, num_heads, q_block, S), lambda b, t: (b, 0, t, 0)),
        )
    else:
        out_shape = jax.ShapeDtypeStruct((B, S, d_model), jnp.float32)
        out_specs = out_spec

    result = pl.pallas_call(
        _make_mha_kernel(num_heads, depth, has_mask, return_attn),
        out_shape=out_shape,
        grid=grid,
        in_specs=in_specs,
        out_specs=out_specs,
        scratch_shapes=[pltpu.VMEM((q_block, d_model), jnp.float32)],
        # For large d_model/S also set vmem_limit_bytes here (weights alone are
        # 4*d_model^2*2 B in bf16) and consider single-buffering the constant
        # weight/bias blocks.
        compiler_params=pltpu.CompilerParams(
            dimension_semantics=("parallel", "parallel")),
    )(*inputs)

    if return_attn:
        out, attn = result
        return out, attn
    return result


def init_params(key, d_model):
    # Deterministic init mimicking nn.Linear default: U(-1/sqrt(fan_in), +1/sqrt(fan_in))
    bound = 1.0 / math.sqrt(d_model)
    keys = jax.random.split(key, 8)
    names = ["wq", "wk", "wv", "fc"]
    params = {}
    for i, name in enumerate(names):
        params[f"{name}_w"] = jax.random.uniform(
            keys[2 * i], (d_model, d_model), jnp.float32, -bound, bound)
        params[f"{name}_b"] = jax.random.uniform(
            keys[2 * i + 1], (d_model,), jnp.float32, -bound, bound)
    return params


def _reference(q, k, v, params, num_heads, mask=None):
    """Plain-JAX f32 reference mirroring the PyTorch forward (correctness check)."""
    B, S, d_model = q.shape
    depth = d_model // num_heads

    def lin(x, w, b):
        return x @ w.T + b

    def split(x):
        return x.reshape(B, S, num_heads, depth).transpose(0, 2, 1, 3)

    qh = split(lin(q, params["wq_w"], params["wq_b"]))
    kh = split(lin(k, params["wk_w"], params["wk_b"]))
    vh = split(lin(v, params["wv_w"], params["wv_b"]))
    logits = jnp.einsum("bhqd,bhkd->bhqk", qh, kh) / jnp.sqrt(jnp.float32(depth))
    if mask is not None:
        logits = logits + mask * (-1e9)
    attn = jax.nn.softmax(logits, axis=-1)
    ctx = jnp.einsum("bhqk,bhkd->bhqd", attn, vh)
    merged = ctx.transpose(0, 2, 1, 3).reshape(B, S, d_model)
    out = merged @ params["fc_w"].T + params["fc_b"]
    return out, attn


if __name__ == "__main__":
    # Toy shapes (sub-128 last dims); see comments for production-shape tiling.
    B, S, d_model, num_heads = 2, 8, 32, 4

    root = jax.random.PRNGKey(0)
    kq, kk, kv, kp = jax.random.split(root, 4)

    q = jax.random.normal(kq, (B, S, d_model), jnp.float32)
    k = jax.random.normal(kk, (B, S, d_model), jnp.float32)
    v = jax.random.normal(kv, (B, S, d_model), jnp.float32)
    params = init_params(kp, d_model)

    # bf16 MXU path -> compare against the f32 reference at a bf16-friendly tolerance.
    TOL = dict(atol=2e-2, rtol=2e-2)

    # mask=None path, with attention weights returned (ScaledDotProductAttention API)
    out, attn = multi_head_attention(q, k, v, params, num_heads)
    jax.block_until_ready((out, attn))
    assert out.shape == (B, S, d_model)
    assert attn.shape == (B, num_heads, S, S)
    ref_out, ref_attn = _reference(q, k, v, params, num_heads)
    assert jnp.allclose(out, ref_out, **TOL)
    assert jnp.allclose(attn.astype(jnp.float32), ref_attn, **TOL)

    # output-only path (MultiHeadAttention API: attention weights discarded)
    out_only = multi_head_attention(q, k, v, params, num_heads, return_attn=False)
    jax.block_until_ready(out_only)
    assert jnp.allclose(out_only, ref_out, **TOL)

    # additive-mask path (causal mask; reference: scaled logits += mask * -1e9)
    causal = jnp.triu(jnp.ones((S, S), jnp.float32), k=1)
    out_m, attn_m = multi_head_attention(q, k, v, params, num_heads, mask=causal)
    jax.block_until_ready((out_m, attn_m))
    ref_out_m, ref_attn_m = _reference(q, k, v, params, num_heads, mask=causal)
    assert jnp.allclose(out_m, ref_out_m, **TOL)
    assert jnp.allclose(attn_m.astype(jnp.float32), ref_attn_m, **TOL)

    print("KERNEL_OK")
</pallas_src>

<mosaic_0001>
module attributes {stable_mosaic.version = 11 : i64} {
  func.func @kernel(%arg0: i32, %arg1: i32, %arg2: memref<1x8x32xbf16, #tpu.memory_space<vmem>>, %arg3: memref<1x8x32xbf16, #tpu.memory_space<vmem>>, %arg4: memref<1x8x32xbf16, #tpu.memory_space<vmem>>, %arg5: memref<32x32xbf16, #tpu.memory_space<vmem>>, %arg6: memref<32x32xbf16, #tpu.memory_space<vmem>>, %arg7: memref<32x32xbf16, #tpu.memory_space<vmem>>, %arg8: memref<32x32xbf16, #tpu.memory_space<vmem>>, %arg9: memref<1x32xf32, #tpu.memory_space<vmem>>, %arg10: memref<1x32xf32, #tpu.memory_space<vmem>>, %arg11: memref<1x32xf32, #tpu.memory_space<vmem>>, %arg12: memref<1x32xf32, #tpu.memory_space<vmem>>, %arg13: memref<1x8x32xf32, #tpu.memory_space<vmem>>, %arg14: memref<1x4x8x8xbf16, #tpu.memory_space<vmem>>, %arg15: memref<8x32xf32, #tpu.memory_space<vmem>>) attributes {dimension_semantics = [#tpu.dimension_semantics<parallel>, #tpu.dimension_semantics<parallel>], iteration_bounds = array<i64: 2, 1>, scalar_prefetch = 0 : i64, scratch_operands = 1 : i64, tpu.core_type = #tpu.core_type<tc>, window_params = [{transform_indices = @transform_0, window_bounds = array<i64: 1, 8, 32>}, {transform_indices = @transform_1, window_bounds = array<i64: 1, 8, 32>}, {transform_indices = @transform_2, window_bounds = array<i64: 1, 8, 32>}, {pipeline_mode = #tpu.pipeline_mode<synchronous>, transform_indices = @transform_3, window_bounds = array<i64: 32, 32>}, {pipeline_mode = #tpu.pipeline_mode<synchronous>, transform_indices = @transform_4, window_bounds = array<i64: 32, 32>}, {pipeline_mode = #tpu.pipeline_mode<synchronous>, transform_indices = @transform_5, window_bounds = array<i64: 32, 32>}, {pipeline_mode = #tpu.pipeline_mode<synchronous>, transform_indices = @transform_6, window_bounds = array<i64: 32, 32>}, {pipeline_mode = #tpu.pipeline_mode<synchronous>, transform_indices = @transform_7, window_bounds = array<i64: 1, 32>}, {pipeline_mode = #tpu.pipeline_mode<synchronous>, transform_indices = @transform_8, window_bounds = array<i64: 1, 32>}, {pipeline_mode = #tpu.pipeline_mode<synchronous>, transform_indices = @transform_9, window_bounds = array<i64: 1, 32>}, {pipeline_mode = #tpu.pipeline_mode<synchronous>, transform_indices = @transform_10, window_bounds = array<i64: 1, 32>}, {transform_indices = @transform_11, window_bounds = array<i64: 1, 8, 32>}, {transform_indices = @transform_12, window_bounds = array<i64: 1, 4, 8, 8>}]} {
    %c0 = arith.constant 0 : index
    %c0_0 = arith.constant 0 : index
    %c0_1 = arith.constant 0 : index
    %0 = vector.load %arg2[%c0, %c0_0, %c0_1] : memref<1x8x32xbf16, #tpu.memory_space<vmem>>, vector<1x8x32xbf16>
    %1 = vector.shape_cast %0 : vector<1x8x32xbf16> to vector<8x32xbf16>
    %c0_2 = arith.constant 0 : index
    %c0_3 = arith.constant 0 : index
    %c0_4 = arith.constant 0 : index
    %2 = vector.load %arg3[%c0_2, %c0_3, %c0_4] : memref<1x8x32xbf16, #tpu.memory_space<vmem>>, vector<1x8x32xbf16>
    %3 = vector.shape_cast %2 : vector<1x8x32xbf16> to vector<8x32xbf16>
    %c0_5 = arith.constant 0 : index
    %c0_6 = arith.constant 0 : index
    %c0_7 = arith.constant 0 : index
    %4 = vector.load %arg4[%c0_5, %c0_6, %c0_7] : memref<1x8x32xbf16, #tpu.memory_space<vmem>>, vector<1x8x32xbf16>
    %5 = vector.shape_cast %4 : vector<1x8x32xbf16> to vector<8x32xbf16>
    %c0_8 = arith.constant 0 : index
    %c0_9 = arith.constant 0 : index
    %6 = vector.load %arg5[%c0_8, %c0_9] : memref<32x32xbf16, #tpu.memory_space<vmem>>, vector<32x32xbf16>
    %cst = arith.constant dense<0.000000e+00> : vector<8x32xf32>
    %7 = tpu.matmul %1, %6, %cst {dimension_numbers = #tpu.dot_dimension_numbers<[1], [1], [0], [0], [0, 0, 1, 0], [], []>} : vector<8x32xbf16>, vector<32x32xbf16>, vector<8x32xf32> -> vector<8x32xf32>
    %c0_10 = arith.constant 0 : index
    %c0_11 = arith.constant 0 : index
    %8 = vector.load %arg9[%c0_10, %c0_11] : memref<1x32xf32, #tpu.memory_space<vmem>>, vector<1x32xf32>
    %9 = vector.broadcast %8 : vector<1x32xf32> to vector<8x32xf32>
    %10 = arith.addf %7, %9 : vector<8x32xf32>
    %c0_12 = arith.constant 0 : index
    %c0_13 = arith.constant 0 : index
    %11 = vector.load %arg6[%c0_12, %c0_13] : memref<32x32xbf16, #tpu.memory_space<vmem>>, vector<32x32xbf16>
    %cst_14 = arith.constant dense<0.000000e+00> : vector<8x32xf32>
    %12 = tpu.matmul %3, %11, %cst_14 {dimension_numbers = #tpu.dot_dimension_numbers<[1], [1], [0], [0], [0, 0, 1, 0], [], []>} : vector<8x32xbf16>, vector<32x32xbf16>, vector<8x32xf32> -> vector<8x32xf32>
    %c0_15 = arith.constant 0 : index
    %c0_16 = arith.constant 0 : index
    %13 = vector.load %arg10[%c0_15, %c0_16] : memref<1x32xf32, #tpu.memory_space<vmem>>, vector<1x32xf32>
    %14 = vector.broadcast %13 : vector<1x32xf32> to vector<8x32xf32>
    %15 = arith.addf %12, %14 : vector<8x32xf32>
    %c0_17 = arith.constant 0 : index
    %c0_18 = arith.constant 0 : index
    %16 = vector.load %arg7[%c0_17, %c0_18] : memref<32x32xbf16, #tpu.memory_space<vmem>>, vector<32x32xbf16>
    %cst_19 = arith.constant dense<0.000000e+00> : vector<8x32xf32>
    %17 = tpu.matmul %5, %16, %cst_19 {dimension_numbers = #tpu.dot_dimension_numbers<[1], [1], [0], [0], [0, 0, 1, 0], [], []>} : vector<8x32xbf16>, vector<32x32xbf16>, vector<8x32xf32> -> vector<8x32xf32>
    %c0_20 = arith.constant 0 : index
    %c0_21 = arith.constant 0 : index
    %18 = vector.load %arg11[%c0_20, %c0_21] : memref<1x32xf32, #tpu.memory_space<vmem>>, vector<1x32xf32>
    %19 = vector.broadcast %18 : vector<1x32xf32> to vector<8x32xf32>
    %20 = arith.addf %17, %19 : vector<8x32xf32>
    %cst_22 = arith.constant 0.353553385 : f32
    %21 = vector.broadcast %cst_22 : f32 to vector<8x32xf32>
    %22 = arith.mulf %10, %21 : vector<8x32xf32>
    %23 = arith.truncf %22 : vector<8x32xf32> to vector<8x32xbf16>
    %24 = arith.truncf %15 : vector<8x32xf32> to vector<8x32xbf16>
    %25 = arith.truncf %20 : vector<8x32xf32> to vector<8x32xbf16>
    %26 = vector.extract_strided_slice %23 {offsets = [0, 0], sizes = [8, 8], strides = [1, 1]} : vector<8x32xbf16> to vector<8x8xbf16>
    %27 = vector.extract_strided_slice %24 {offsets = [0, 0], sizes = [8, 8], strides = [1, 1]} : vector<8x32xbf16> to vector<8x8xbf16>
    %28 = vector.extract_strided_slice %25 {offsets = [0, 0], sizes = [8, 8], strides = [1, 1]} : vector<8x32xbf16> to vector<8x8xbf16>
    %cst_23 = arith.constant dense<0.000000e+00> : vector<8x8xf32>
    %29 = tpu.matmul %26, %27, %cst_23 {dimension_numbers = #tpu.dot_dimension_numbers<[1], [1], [0], [0], [0, 0, 1, 0], [], []>} : vector<8x8xbf16>, vector<8x8xbf16>, vector<8x8xf32> -> vector<8x8xf32>
    %cst_24 = arith.constant dense<0xFF800000> : vector<8xf32>
    %30 = vector.multi_reduction <maximumf>, %29, %cst_24 [1] : vector<8x8xf32> to vector<8xf32>
    %31 = vector.shape_cast %30 : vector<8xf32> to vector<8x1xf32>
    %32 = vector.broadcast %31 : vector<8x1xf32> to vector<8x8xf32>
    %33 = arith.subf %29, %32 : vector<8x8xf32>
    %34 = math.exp %33 : vector<8x8xf32>
    %cst_25 = arith.constant dense<0.000000e+00> : vector<8xf32>
    %35 = vector.multi_reduction <add>, %34, %cst_25 [1] : vector<8x8xf32> to vector<8xf32>
    %36 = vector.shape_cast %35 : vector<8xf32> to vector<8x1xf32>
    %37 = tpu.reciprocal %36 {approx = true} : vector<8x1xf32> -> vector<8x1xf32>
    %38 = vector.broadcast %37 : vector<8x1xf32> to vector<8x8xf32>
    %39 = arith.mulf %34, %38 : vector<8x8xf32>
    %40 = arith.truncf %39 : vector<8x8xf32> to vector<8x8xbf16>
    %c0_26 = arith.constant 0 : index
    %c0_27 = arith.constant 0 : index
    %c0_28 = arith.constant 0 : index
    %c0_29 = arith.constant 0 : index
    %41 = vector.load %arg14[%c0_26, %c0_27, %c0_28, %c0_29] : memref<1x4x8x8xbf16, #tpu.memory_space<vmem>>, vector<1x1x8x8xbf16>
    %42 = vector.shape_cast %41 : vector<1x1x8x8xbf16> to vector<8x8xbf16>
    %43 = vector.shape_cast %40 : vector<8x8xbf16> to vector<1x1x8x8xbf16>
    tpu.vector_store %arg14[%c0_26, %c0_27, %c0_28, %c0_29], %43 {strides = array<i32>} : memref<1x4x8x8xbf16, #tpu.memory_space<vmem>>, vector<1x1x8x8xbf16>,
    %cst_30 = arith.constant dense<0.000000e+00> : vector<8x8xf32>
    %44 = tpu.matmul %40, %28, %cst_30 {dimension_numbers = #tpu.dot_dimension_numbers<[1], [0], [0], [1], [0, 0, 1, 1], [], []>} : vector<8x8xbf16>, vector<8x8xbf16>, vector<8x8xf32> -> vector<8x8xf32>
    %c0_31 = arith.constant 0 : index
    %c0_32 = arith.constant 0 : index
    %45 = vector.load %arg15[%c0_31, %c0_32] : memref<8x32xf32, #tpu.memory_space<vmem>>, vector<8x8xf32>
    tpu.vector_store %arg15[%c0_31, %c0_32], %44 {strides = array<i32>} : memref<8x32xf32, #tpu.memory_space<vmem>>, vector<8x8xf32>,
    %46 = vector.extract_strided_slice %23 {offsets = [0, 8], sizes = [8, 8], strides = [1, 1]} : vector<8x32xbf16> to vector<8x8xbf16>
    %47 = vector.extract_strided_slice %24 {offsets = [0, 8], sizes = [8, 8], strides = [1, 1]} : vector<8x32xbf16> to vector<8x8xbf16>
    %48 = vector.extract_strided_slice %25 {offsets = [0, 8], sizes = [8, 8], strides = [1, 1]} : vector<8x32xbf16> to vector<8x8xbf16>
    %cst_33 = arith.constant dense<0.000000e+00> : vector<8x8xf32>
    %49 = tpu.matmul %46, %47, %cst_33 {dimension_numbers = #tpu.dot_dimension_numbers<[1], [1], [0], [0], [0, 0, 1, 0], [], []>} : vector<8x8xbf16>, vector<8x8xbf16>, vector<8x8xf32> -> vector<8x8xf32>
    %cst_34 = arith.constant dense<0xFF800000> : vector<8xf32>
    %50 = vector.multi_reduction <maximumf>, %49, %cst_34 [1] : vector<8x8xf32> to vector<8xf32>
    %51 = vector.shape_cast %50 : vector<8xf32> to vector<8x1xf32>
    %52 = vector.broadcast %51 : vector<8x1xf32> to vector<8x8xf32>
    %53 = arith.subf %49, %52 : vector<8x8xf32>
    %54 = math.exp %53 : vector<8x8xf32>
    %cst_35 = arith.constant dense<0.000000e+00> : vector<8xf32>
    %55 = vector.multi_reduction <add>, %54, %cst_35 [1] : vector<8x8xf32> to vector<8xf32>
    %56 = vector.shape_cast %55 : vector<8xf32> to vector<8x1xf32>
    %57 = tpu.reciprocal %56 {approx = true} : vector<8x1xf32> -> vector<8x1xf32>
    %58 = vector.broadcast %57 : vector<8x1xf32> to vector<8x8xf32>
    %59 = arith.mulf %54, %58 : vector<8x8xf32>
    %60 = arith.truncf %59 : vector<8x8xf32> to vector<8x8xbf16>
    %c0_36 = arith.constant 0 : index
    %c1 = arith.constant 1 : index
    %c0_37 = arith.constant 0 : index
    %c0_38 = arith.constant 0 : index
    %61 = vector.load %arg14[%c0_36, %c1, %c0_37, %c0_38] : memref<1x4x8x8xbf16, #tpu.memory_space<vmem>>, vector<1x1x8x8xbf16>
    %62 = vector.shape_cast %61 : vector<1x1x8x8xbf16> to vector<8x8xbf16>
    %63 = vector.shape_cast %60 : vector<8x8xbf16> to vector<1x1x8x8xbf16>
    tpu.vector_store %arg14[%c0_36, %c1, %c0_37, %c0_38], %63 {strides = array<i32>} : memref<1x4x8x8xbf16, #tpu.memory_space<vmem>>, vector<1x1x8x8xbf16>,
    %cst_39 = arith.constant dense<0.000000e+00> : vector<8x8xf32>
    %64 = tpu.matmul %60, %48, %cst_39 {dimension_numbers = #tpu.dot_dimension_numbers<[1], [0], [0], [1], [0, 0, 1, 1], [], []>} : vector<8x8xbf16>, vector<8x8xbf16>, vector<8x8xf32> -> vector<8x8xf32>
    %c0_40 = arith.constant 0 : index
    %c8 = arith.constant 8 : index
    %65 = vector.load %arg15[%c0_40, %c8] : memref<8x32xf32, #tpu.memory_space<vmem>>, vector<8x8xf32>
    tpu.vector_store %arg15[%c0_40, %c8], %64 {strides = array<i32>} : memref<8x32xf32, #tpu.memory_space<vmem>>, vector<8x8xf32>,
    %66 = vector.extract_strided_slice %23 {offsets = [0, 16], sizes = [8, 8], strides = [1, 1]} : vector<8x32xbf16> to vector<8x8xbf16>
    %67 = vector.extract_strided_slice %24 {offsets = [0, 16], sizes = [8, 8], strides = [1, 1]} : vector<8x32xbf16> to vector<8x8xbf16>
    %68 = vector.extract_strided_slice %25 {offsets = [0, 16], sizes = [8, 8], strides = [1, 1]} : vector<8x32xbf16> to vector<8x8xbf16>
    %cst_41 = arith.constant dense<0.000000e+00> : vector<8x8xf32>
    %69 = tpu.matmul %66, %67, %cst_41 {dimension_numbers = #tpu.dot_dimension_numbers<[1], [1], [0], [0], [0, 0, 1, 0], [], []>} : vector<8x8xbf16>, vector<8x8xbf16>, vector<8x8xf32> -> vector<8x8xf32>
    %cst_42 = arith.constant dense<0xFF800000> : vector<8xf32>
    %70 = vector.multi_reduction <maximumf>, %69, %cst_42 [1] : vector<8x8xf32> to vector<8xf32>
    %71 = vector.shape_cast %70 : vector<8xf32> to vector<8x1xf32>
    %72 = vector.broadcast %71 : vector<8x1xf32> to vector<8x8xf32>
    %73 = arith.subf %69, %72 : vector<8x8xf32>
    %74 = math.exp %73 : vector<8x8xf32>
    %cst_43 = arith.constant dense<0.000000e+00> : vector<8xf32>
    %75 = vector.multi_reduction <add>, %74, %cst_43 [1] : vector<8x8xf32> to vector<8xf32>
    %76 = vector.shape_cast %75 : vector<8xf32> to vector<8x1xf32>
    %77 = tpu.reciprocal %76 {approx = true} : vector<8x1xf32> -> vector<8x1xf32>
    %78 = vector.broadcast %77 : vector<8x1xf32> to vector<8x8xf32>
    %79 = arith.mulf %74, %78 : vector<8x8xf32>
    %80 = arith.truncf %79 : vector<8x8xf32> to vector<8x8xbf16>
    %c0_44 = arith.constant 0 : index
    %c2 = arith.constant 2 : index
    %c0_45 = arith.constant 0 : index
    %c0_46 = arith.constant 0 : index
    %81 = vector.load %arg14[%c0_44, %c2, %c0_45, %c0_46] : memref<1x4x8x8xbf16, #tpu.memory_space<vmem>>, vector<1x1x8x8xbf16>
    %82 = vector.shape_cast %81 : vector<1x1x8x8xbf16> to vector<8x8xbf16>
    %83 = vector.shape_cast %80 : vector<8x8xbf16> to vector<1x1x8x8xbf16>
    tpu.vector_store %arg14[%c0_44, %c2, %c0_45, %c0_46], %83 {strides = array<i32>} : memref<1x4x8x8xbf16, #tpu.memory_space<vmem>>, vector<1x1x8x8xbf16>,
    %cst_47 = arith.constant dense<0.000000e+00> : vector<8x8xf32>
    %84 = tpu.matmul %80, %68, %cst_47 {dimension_numbers = #tpu.dot_dimension_numbers<[1], [0], [0], [1], [0, 0, 1, 1], [], []>} : vector<8x8xbf16>, vector<8x8xbf16>, vector<8x8xf32> -> vector<8x8xf32>
    %c0_48 = arith.constant 0 : index
    %c16 = arith.constant 16 : index
    %85 = vector.load %arg15[%c0_48, %c16] : memref<8x32xf32, #tpu.memory_space<vmem>>, vector<8x8xf32>
    tpu.vector_store %arg15[%c0_48, %c16], %84 {strides = array<i32>} : memref<8x32xf32, #tpu.memory_space<vmem>>, vector<8x8xf32>,
    %86 = vector.extract_strided_slice %23 {offsets = [0, 24], sizes = [8, 8], strides = [1, 1]} : vector<8x32xbf16> to vector<8x8xbf16>
    %87 = vector.extract_strided_slice %24 {offsets = [0, 24], sizes = [8, 8], strides = [1, 1]} : vector<8x32xbf16> to vector<8x8xbf16>
    %88 = vector.extract_strided_slice %25 {offsets = [0, 24], sizes = [8, 8], strides = [1, 1]} : vector<8x32xbf16> to vector<8x8xbf16>
    %cst_49 = arith.constant dense<0.000000e+00> : vector<8x8xf32>
    %89 = tpu.matmul %86, %87, %cst_49 {dimension_numbers = #tpu.dot_dimension_numbers<[1], [1], [0], [0], [0, 0, 1, 0], [], []>} : vector<8x8xbf16>, vector<8x8xbf16>, vector<8x8xf32> -> vector<8x8xf32>
    %cst_50 = arith.constant dense<0xFF800000> : vector<8xf32>
    %90 = vector.multi_reduction <maximumf>, %89, %cst_50 [1] : vector<8x8xf32> to vector<8xf32>
    %91 = vector.shape_cast %90 : vector<8xf32> to vector<8x1xf32>
    %92 = vector.broadcast %91 : vector<8x1xf32> to vector<8x8xf32>
    %93 = arith.subf %89, %92 : vector<8x8xf32>
    %94 = math.exp %93 : vector<8x8xf32>
    %cst_51 = arith.constant dense<0.000000e+00> : vector<8xf32>
    %95 = vector.multi_reduction <add>, %94, %cst_51 [1] : vector<8x8xf32> to vector<8xf32>
    %96 = vector.shape_cast %95 : vector<8xf32> to vector<8x1xf32>
    %97 = tpu.reciprocal %96 {approx = true} : vector<8x1xf32> -> vector<8x1xf32>
    %98 = vector.broadcast %97 : vector<8x1xf32> to vector<8x8xf32>
    %99 = arith.mulf %94, %98 : vector<8x8xf32>
    %100 = arith.truncf %99 : vector<8x8xf32> to vector<8x8xbf16>
    %c0_52 = arith.constant 0 : index
    %c3 = arith.constant 3 : index
    %c0_53 = arith.constant 0 : index
    %c0_54 = arith.constant 0 : index
    %101 = vector.load %arg14[%c0_52, %c3, %c0_53, %c0_54] : memref<1x4x8x8xbf16, #tpu.memory_space<vmem>>, vector<1x1x8x8xbf16>
    %102 = vector.shape_cast %101 : vector<1x1x8x8xbf16> to vector<8x8xbf16>
    %103 = vector.shape_cast %100 : vector<8x8xbf16> to vector<1x1x8x8xbf16>
    tpu.vector_store %arg14[%c0_52, %c3, %c0_53, %c0_54], %103 {strides = array<i32>} : memref<1x4x8x8xbf16, #tpu.memory_space<vmem>>, vector<1x1x8x8xbf16>,
    %cst_55 = arith.constant dense<0.000000e+00> : vector<8x8xf32>
    %104 = tpu.matmul %100, %88, %cst_55 {dimension_numbers = #tpu.dot_dimension_numbers<[1], [0], [0], [1], [0, 0, 1, 1], [], []>} : vector<8x8xbf16>, vector<8x8xbf16>, vector<8x8xf32> -> vector<8x8xf32>
    %c0_56 = arith.constant 0 : index
    %c24 = arith.constant 24 : index
    %105 = vector.load %arg15[%c0_56, %c24] : memref<8x32xf32, #tpu.memory_space<vmem>>, vector<8x8xf32>
    tpu.vector_store %arg15[%c0_56, %c24], %104 {strides = array<i32>} : memref<8x32xf32, #tpu.memory_space<vmem>>, vector<8x8xf32>,
    %c0_57 = arith.constant 0 : index
    %c0_58 = arith.constant 0 : index
    %106 = vector.load %arg15[%c0_57, %c0_58] : memref<8x32xf32, #tpu.memory_space<vmem>>, vector<8x32xf32>
    %107 = arith.truncf %106 : vector<8x32xf32> to vector<8x32xbf16>
    %c0_59 = arith.constant 0 : index
    %c0_60 = arith.constant 0 : index
    %108 = vector.load %arg8[%c0_59, %c0_60] : memref<32x32xbf16, #tpu.memory_space<vmem>>, vector<32x32xbf16>
    %cst_61 = arith.constant dense<0.000000e+00> : vector<8x32xf32>
    %109 = tpu.matmul %107, %108, %cst_61 {dimension_numbers = #tpu.dot_dimension_numbers<[1], [1], [0], [0], [0, 0, 1, 0], [], []>} : vector<8x32xbf16>, vector<32x32xbf16>, vector<8x32xf32> -> vector<8x32xf32>
    %c0_62 = arith.constant 0 : index
    %c0_63 = arith.constant 0 : index
    %110 = vector.load %arg12[%c0_62, %c0_63] : memref<1x32xf32, #tpu.memory_space<vmem>>, vector<1x32xf32>
    %111 = vector.broadcast %110 : vector<1x32xf32> to vector<8x32xf32>
    %112 = arith.addf %109, %111 : vector<8x32xf32>
    %c0_64 = arith.constant 0 : index
    %c0_65 = arith.constant 0 : index
    %c0_66 = arith.constant 0 : index
    %113 = vector.load %arg13[%c0_64, %c0_65, %c0_66] : memref<1x8x32xf32, #tpu.memory_space<vmem>>, vector<1x8x32xf32>
    %114 = vector.shape_cast %113 : vector<1x8x32xf32> to vector<8x32xf32>
    %115 = vector.shape_cast %112 : vector<8x32xf32> to vector<1x8x32xf32>
    tpu.vector_store %arg13[%c0_64, %c0_65, %c0_66], %115 {strides = array<i32>} : memref<1x8x32xf32, #tpu.memory_space<vmem>>, vector<1x8x32xf32>,
    return
  }
  func.func @transform_0(%arg0: i32, %arg1: i32) -> (i32, i32, i32) {
    %c0_i32 = arith.constant 0 : i32
    %c0_i32_0 = arith.constant 0 : i32
    return %arg0, %arg1, %c0_i32 : i32, i32, i32
  }
  func.func @transform_1(%arg0: i32, %arg1: i32) -> (i32, i32, i32) {
    %c0_i32 = arith.constant 0 : i32
    %c0_i32_0 = arith.constant 0 : i32
    %c0_i32_1 = arith.constant 0 : i32
    return %arg0, %c0_i32, %c0_i32_0 : i32, i32, i32
  }
  func.func @transform_2(%arg0: i32, %arg1: i32) -> (i32, i32, i32) {
    %c0_i32 = arith.constant 0 : i32
    %c0_i32_0 = arith.constant 0 : i32
    %c0_i32_1 = arith.constant 0 : i32
    return %arg0, %c0_i32, %c0_i32_0 : i32, i32, i32
  }
  func.func @transform_3(%arg0: i32, %arg1: i32) -> (i32, i32) {
    %c0_i32 = arith.constant 0 : i32
    %c0_i32_0 = arith.constant 0 : i32
    %c0_i32_1 = arith.constant 0 : i32
    return %c0_i32, %c0_i32_0 : i32, i32
  }
  func.func @transform_4(%arg0: i32, %arg1: i32) -> (i32, i32) {
    %c0_i32 = arith.constant 0 : i32
    %c0_i32_0 = arith.constant 0 : i32
    %c0_i32_1 = arith.constant 0 : i32
    return %c0_i32, %c0_i32_0 : i32, i32
  }
  func.func @transform_5(%arg0: i32, %arg1: i32) -> (i32, i32) {
    %c0_i32 = arith.constant 0 : i32
    %c0_i32_0 = arith.constant 0 : i32
    %c0_i32_1 = arith.constant 0 : i32
    return %c0_i32, %c0_i32_0 : i32, i32
  }
  func.func @transform_6(%arg0: i32, %arg1: i32) -> (i32, i32) {
    %c0_i32 = arith.constant 0 : i32
    %c0_i32_0 = arith.constant 0 : i32
    %c0_i32_1 = arith.constant 0 : i32
    return %c0_i32, %c0_i32_0 : i32, i32
  }
  func.func @transform_7(%arg0: i32, %arg1: i32) -> (i32, i32) {
    %c0_i32 = arith.constant 0 : i32
    %c0_i32_0 = arith.constant 0 : i32
    %c0_i32_1 = arith.constant 0 : i32
    return %c0_i32, %c0_i32_0 : i32, i32
  }
  func.func @transform_8(%arg0: i32, %arg1: i32) -> (i32, i32) {
    %c0_i32 = arith.constant 0 : i32
    %c0_i32_0 = arith.constant 0 : i32
    %c0_i32_1 = arith.constant 0 : i32
    return %c0_i32, %c0_i32_0 : i32, i32
  }
  func.func @transform_9(%arg0: i32, %arg1: i32) -> (i32, i32) {
    %c0_i32 = arith.constant 0 : i32
    %c0_i32_0 = arith.constant 0 : i32
    %c0_i32_1 = arith.constant 0 : i32
    return %c0_i32, %c0_i32_0 : i32, i32
  }
  func.func @transform_10(%arg0: i32, %arg1: i32) -> (i32, i32) {
    %c0_i32 = arith.constant 0 : i32
    %c0_i32_0 = arith.constant 0 : i32
    %c0_i32_1 = arith.constant 0 : i32
    return %c0_i32, %c0_i32_0 : i32, i32
  }
  func.func @transform_11(%arg0: i32, %arg1: i32) -> (i32, i32, i32) {
    %c0_i32 = arith.constant 0 : i32
    %c0_i32_0 = arith.constant 0 : i32
    return %arg0, %arg1, %c0_i32 : i32, i32, i32
  }
  func.func @transform_12(%arg0: i32, %arg1: i32) -> (i32, i32, i32, i32) {
    %c0_i32 = arith.constant 0 : i32
    %c0_i32_0 = arith.constant 0 : i32
    %c0_i32_1 = arith.constant 0 : i32
    return %arg0, %c0_i32, %arg1, %c0_i32_0 : i32, i32, i32, i32
  }
}

</mosaic_0001>

<bundles_post_ra>
// kernel: tpu_custom_call.1
= control target key start
LH: loop header
LB: loop body
LE: loop exit
PB: predicated region body
PF: predicated region fallthrough
CT: control target
= control target key end

     0   :  { %s2721_s0 = inlined_call_operand.hbm [shape: bf16[2,8,32], index: 0, kind: input, shape index: {}]   ;;  %s2722_s1 = inlined_call_operand.hbm [shape: bf16[2,8,32], index: 1, kind: input, shape index: {}]   ;;  %s2723_s2 = inlined_call_operand.hbm [shape: bf16[2,8,32], index: 2, kind: input, shape index: {}]   ;;  %s2724_s3 = inlined_call_operand.hbm [shape: bf16[32,32], index: 3, kind: input, shape index: {}]   ;;  %s2725_s4 = inlined_call_operand.hbm [shape: bf16[32,32], index: 4, kind: input, shape index: {}]   ;;  %s2726_s5 = inlined_call_operand.hbm [shape: bf16[32,32], index: 5, kind: input, shape index: {}]   ;;  %s2727_s6 = inlined_call_operand.hbm [shape: bf16[32,32], index: 6, kind: input, shape index: {}]   ;;  %s2728_s7 = inlined_call_operand.vmem [shape: f32[1,32], index: 7, kind: input, shape index: {}]   ;;  %s2729_s8 = inlined_call_operand.vmem [shape: f32[1,32], index: 8, kind: input, shape index: {}]   ;;  %s2730_s9 = inlined_call_operand.vmem [shape: f32[1,32], index: 9, kind: input, shape index: {}]   ;;  %s2731_s10 = inlined_call_operand.vmem [shape: f32[1,32], index: 10, kind: input, shape index: {}]   ;;  %s2732_s11 = inlined_call_operand.hbm [shape: f32[2,8,32], index: 11, kind: output, shape index: {0}]   ;;  %s2733_s12 = inlined_call_operand.hbm [shape: bf16[2,4,8,8], index: 12, kind: output, shape index: {1}]  }
   0x1   :  { %2753 = sst [smem:[#allocation31_spill]] %s2722_s1 }
   0x2   :  { %2754 = sst [smem:[#allocation32_spill]] %s2724_s3 }
   0x3   :  { %2755 = sst [smem:[#allocation33_spill]] %s2725_s4 }
   0x4   :  { %2756 = sst [smem:[#allocation34_spill]] %s2726_s5 }
   0x5   :  { %2757 = sst [smem:[#allocation35_spill]] %s2731_s10 }
   0x6   :  { %2758 = sst [smem:[#allocation36_spill]] %s2732_s11 }
   0x7   :  { %2759 = sst [smem:[#allocation37_spill]] %s2733_s12 }
   0x8   :  { %18 = vsyncpa [#allocation4], 0 }
   0x9   :  { %20 = vsyncpa [#allocation4 + $0x1], 0 }
   0xa   :  { %21 = vsyncpa [#allocation7], 0 }
   0xb   :  { %23 = vsyncpa [#allocation7 + $0x1], 0 }
   0xc   :  { %24 = vsyncpa [#allocation10], 0 }
   0xd   :  { %25 = vsyncpa [#allocation13], 0 }
   0xe   :  { %26 = vsyncpa [#allocation5], 0 }
   0xf   :  { %28 = vsyncpa [#allocation5 + $0x1], 0 }
  0x10   :  { %29 = vsyncpa [#allocation17], 0 }
  0x11   :  { %31 = vsyncpa [#allocation17 + $0x1], 0  ;;  %s2297_s21 = smov 0   ;;  %s2299_s22 = smov 0  }
  0x12   :  { %s2301_s23 = smov 0   ;;  %s2303_s24 = smov 0  }
  0x13   :  { %s2305_s25 = smov 0   ;;  %s2307_s26 = smov 0  }
  0x14 LB: > { %2760 = sst [smem:[#allocation24_spill]] %s2189_s21  ;;  %s2328_s27 = sadd.s32 4294967295, %s2209_s26   ;;  %s2209_s26 = sphi %s2307_s26, %s37_s26   ;;  %s2205_s25 = sphi %s2305_s25, %s2801_s25   ;;  %s2201_s24 = sphi %s2303_s24, %s2800_s24   ;;  %s2197_s23 = sphi %s2301_s23, %s2804_s23   ;;  %s2193_s22 = sphi %s2299_s22, %s2803_s22   ;;  %s2189_s21 = sphi %s2297_s21, %s2802_s21  }
  0x15   : > { %2761 = sst [smem:[#allocation25_spill]] %s2205_s25  ;;  %p1580_p0 = scmp.ge.s32.totalorder %s2209_s26, 1 }
  0x16   : > { %2762 = sst [smem:[#allocation26_spill]] %s2209_s26  ;;  %p2746_p1 = scmp.eq.s32.totalorder %s2328_s27, 0 }
  0x17   : > { %p358_p2 = scmp.lt.s32.totalorder %s2209_s26, 3  ;;  %s2211_s29 = smov [#allocation9]  }
  0x18   : > { %s370_s30 = sshll.u32 %s2211_s29, 4  ;;  %s2212_s14 = smov [#allocation12]   ;;  %s371_s30 = int_to_ptr.vmem [resolvable:$true] %s370_s30 }
  0x19   : > { %p2333_p3 = pnand %p1580_p0, %p358_p2  ;;  %s396_s15 = sshll.u32 %s2212_s14, 4  ;;  %s397_s15 = int_to_ptr.vmem [resolvable:$true] %s396_s15 }
  0x1a   : > { %s1910_s16 = scalar_lea.vmem %s371_s30, 256  ;;  %p1918_p11 = scmp.lt.s32.totalorder %s371_s30, %s371_s30 }
  0x1b   : > { %p1771_p4 = pneg %p2333_p3  ;;  %p1911_p8 = scmp.ne.s32.totalorder %s371_s30, %s1910_s16 }
  0x1c   : > { %p1919_p12 = scmp.lt.s32.totalorder %s1910_s16, %s1910_s16 }
  0x1d   : > { %p2342_p6 = pnand %p1771_p4, %p2746_p1 }
  0x1e   : > { %p1920_p13 = por %p1919_p12, %p1918_p11 }
  0x1f   : > { %p2747_p7 = pneg %p2342_p6 }
  0x21   : > { %p1913_p9 = pnand %p1911_p8, %p2747_p7 }
  0x23   : > { %p1914_p10 = pneg %p1913_p9 }
  0x25   : > { %p1921_p0 = pnand %p1920_p13, %p1914_p10 }
  0x27   : > { %1924 = shalt.err (!%p1921_p0)
}
  0x28   : > { %s2734_s17 = smov 64   ;;  %s2736_s18 = smov 4  }
  0x29   : > { %s2765_s3 = sld [smem:[#allocation32_spill]]  ;;  %s1936_s29 = scalar_lea.vmem %s397_s15, 256 }
  0x2a   : > { %p1937_p2 = scmp.ne.s32.totalorder %s397_s15, %s1936_s29  ;;  %p1944_p9 = scmp.lt.s32.totalorder %s397_s15, %s397_s15 }
  0x2b   : > { %p1945_p10 = scmp.lt.s32.totalorder %s1936_s29, %s1936_s29 }
  0x2c   : > { %p1939_p4 = pnand %p1937_p2, %p2747_p7 }
  0x2d   : > { %p1946_p11 = por %p1945_p10, %p1944_p9 }
  0x2e   : > { %p1940_p8 = pneg %p1939_p4 }
  0x2f   : > { %1774 = dma.hbm_to_vmem [thread:$0]  (!%p2342_p6), %s2765_s3, 256, %s371_s30, [#allocation10], %s2734_s17, %s2734_s17, %s2736_s18  }
  0x30   : > { %p1947_p12 = pnand %p1946_p11, %p1940_p8 }
  0x32   : > { %1950 = shalt.err (!%p1947_p12)
}
  0x33   : > { %s2766_s5 = sld [smem:[#allocation34_spill]]  ;;  %s1579_s30 = sadd.s32 4294967294, %s2209_s26  }
  0x34   : > { %s49_s19 = sadd.s32 1, %s2205_s25  ;;  %s58_s20 = sadd.s32 1, %s2197_s23 }
  0x35   : > { %p51_p13 = scmp.ge.s32.totalorder %s49_s19, 2  ;;  %p65_p0 = scmp.ne.s32.totalorder %s2197_s23, %s2193_s22 }
  0x36   : > { %p66_p2 = scmp.eq.s32.totalorder %s2209_s26, 0  ;;  %p71_p8 = scmp.ne.s32.totalorder %s2193_s22, %s2189_s21 }
  0x37   : > { %s2806_s19 = smov (%p51_p13, %s49_s19), 0  ;;  %p317_p9 = scmp.eq.s32.totalorder %s2328_s27, 1 }
  0x38   : > { %2767 = sst [smem:[#allocation27_spill]] %s2806_s19  ;;  %p2378_p4 = por %p66_p2, %p65_p0 }
  0x39   : > { %1780 = dma.hbm_to_vmem [thread:$0]  (!%p2342_p6), %s2766_s5, 256, %s397_s15, [#allocation13], %s2734_s17, %s2734_s17, %s2736_s18  }
  0x3a   : > { %s53_s15 = ssub.s32 %s2205_s25, %s2806_s19  ;;  %p2389_p11 = por %p2746_p1, %p71_p8 }
  0x3b   : > { %p56_p10 = scmp.eq.s32.totalorder %s53_s15, 0  ;;  %p2393_p12 = por %p317_p9, %p65_p0 }
  0x3c   : > { %p323_p13 = scmp.eq.s32.totalorder %s1579_s30, 1  ;;  %p1805_p5 = scmp.lt.s32.totalorder %s2209_s26, 2 }
  0x3d   : > { %s2770_s16 = scalar_select %p2393_p12, 1, 0 }
  0x3e   : > { %s2398_s17 = scalar_select %p56_p10, %s2197_s23, %s58_s20  }
  0x3f   : > { %2771 = sst [smem:[#allocation28_spill]] %s2770_s16  ;;  %p2400_p2 = por %p323_p13, %p71_p8 }
  0x40   : > { %2772 = sst [smem:[#allocation29_spill]] %s2398_s17  ;;  %s2743_s3 = sand.u32 1, %s2197_s23  }
  0x41   : > { %s2773_s18 = scalar_select %p2400_p2, 1, 0 }
  0x42   : > { %s2407_s5 = sshll.u32 %s2205_s25, 6  ;;  %s2411_s15 = sshll.u32 %s2743_s3, 2 }
  0x43   : > { %2774 = sst [smem:[#allocation30_spill]] %s2773_s18  ;;  %p2415_p0 = pnand %p1805_p5, %p2378_p4 }
  0x44   : > { %s454_s30 = sand.u32 1, %s2209_s26   ;;  %s2776_s1 = sld [smem:[#allocation31_spill]] }
  0x45   : > { %s458_s21 = scalar_lea.vmem [#allocation6], %s2411_s15  ;;  %s2425_s11 = scalar_lea.sflag [#allocation7], %s454_s30 }
  0x46   : > { %s465_s25 = sshll.u32 %s458_s21, 4  ;;  %p2748_p8 = pneg %p2415_p0  ;;  %s466_s25 = int_to_ptr.vmem [resolvable:$true] %s465_s25 }
  0x47   : > { %s1964_s29 = scalar_lea.vmem %s466_s25, 64  ;;  %s2215_s3 = smov [#allocation6]  }
  0x48   : > { %p1965_p9 = scmp.ne.s32.totalorder %s466_s25, %s1964_s29  ;;  %s1969_s10 = sshll.u32 %s2215_s3, 4  ;;  %s1970_s10 = int_to_ptr.vmem [resolvable:$false] %s1969_s10 }
  0x49   : > { %s1971_s26 = scalar_lea.vmem %s1970_s10, 128  ;;  %p1972_p10 = scmp.lt.s32.totalorder %s466_s25, %s1970_s10 }
  0x4a   : > { %s463_s18 = scalar_lea.hbm %s2776_s1, %s2407_s5  ;;  %p1967_p5 = pnand %p1965_p9, %p2748_p8 }
  0x4b   : > { %p1973_p13 = scmp.lt.s32.totalorder %s1971_s26, %s1964_s29 }
  0x4c   : > { %p1968_p4 = pneg %p1967_p5 }
  0x4d   : > { %p1974_p1 = por %p1973_p13, %p1972_p10 }
  0x4f   : > { %p1975_p7 = pnand %p1974_p1, %p1968_p4 }
  0x51   : > { %1978 = shalt.err (!%p1975_p7)
}
  0x52   : > { %1790 = dma.hbm_to_vmem [thread:$0]  (!%p2415_p0), %s463_s18, 64, %s466_s25, %s2425_s11  }
  0x53   : > { %s2216_s21 = smov [#allocation11]   ;;  %s2217_s30 = smov [#allocation14]  }
  0x54   : > { %s383_s17 = sshll.u32 %s2216_s21, 4  ;;  %s409_s20 = sshll.u32 %s2217_s30, 4  ;;  %s384_s17 = int_to_ptr.vmem [resolvable:$true] %s383_s17  ;;  %s410_s20 = int_to_ptr.vmem [resolvable:$true] %s409_s20 }
  0x55   : > { %s1990_s1 = scalar_lea.vmem %s384_s17, 256  ;;  %p2777_p5 = pneg %p2342_p6 }
  0x56   : > { %p1991_p9 = scmp.ne.s32.totalorder %s384_s17, %s1990_s1  ;;  %p1998_p12 = scmp.lt.s32.totalorder %s384_s17, %s384_s17 }
  0x57   : > { %p1999_p10 = scmp.lt.s32.totalorder %s1990_s1, %s1990_s1 }
  0x58   : > { %p1993_p8 = pnand %p1991_p9, %p2777_p5 }
  0x59   : > { %p2000_p1 = por %p1999_p10, %p1998_p12 }
  0x5a   : > { %p1994_p2 = pneg %p1993_p8 }
  0x5c   : > { %p2001_p7 = pnand %p2000_p1, %p1994_p2 }
  0x5e   : > { %2004 = shalt.err (!%p2001_p7)
}
  0x5f   : > { %s2778_s3 = smov 4   ;;  %s2779_s10 = smov 64  }
  0x60   : > { %s2780_s4 = sld [smem:[#allocation33_spill]]  ;;  %s2016_s18 = scalar_lea.vmem %s410_s20, 256 }
  0x61   : > { %p2017_p4 = scmp.ne.s32.totalorder %s410_s20, %s2016_s18  ;;  %p2781_p8 = pmov %p2777_p5 }
  0x62   : > { %p2024_p12 = scmp.lt.s32.totalorder %s410_s20, %s410_s20  ;;  %p2025_p2 = scmp.lt.s32.totalorder %s2016_s18, %s2016_s18 }
  0x63   : > { %p2019_p13 = pnand %p2017_p4, %p2781_p8 }
  0x64   : > { %p2026_p5 = por %p2025_p2, %p2024_p12 }
  0x65   : > { %p2020_p9 = pneg %p2019_p13 }
  0x66   : > { %1777 = dma.hbm_to_vmem [thread:$0]  (!%p2342_p6), %s2780_s4, 256, %s384_s17, [#allocation10], %s2779_s10, %s2779_s10, %s2778_s3  }
  0x67   : > { %p2027_p10 = pnand %p2026_p5, %p2020_p9 }
  0x69   : > { %2030 = shalt.err (!%p2027_p10)
}
  0x6a   : > { %1783 = dma.hbm_to_vmem [thread:$0]  (!%p2342_p6), %s2727_s6, 256, %s410_s20, [#allocation13], %s2779_s10, %s2779_s10, %s2778_s3  }
  0x6b   : > { %s445_s30 = scalar_lea.hbm %s2721_s0, %s2407_s5  ;;  %s439_s25 = scalar_lea.vmem [#allocation3], %s2411_s15 }
  0x6c   : > { %s447_s26 = sshll.u32 %s439_s25, 4  ;;  %s481_s4 = scalar_lea.hbm %s2723_s2, %s2407_s5  ;;  %s448_s26 = int_to_ptr.vmem [resolvable:$true] %s447_s26 }
  0x6d   : > { %s2782_s12 = sand.u32 1, %s2197_s23   ;;  %s2044_s1 = scalar_lea.vmem %s448_s26, 64 }
  0x6e   : > { %s436_s16 = scalar_lea.sflag [#allocation4], %s2782_s12  ;;  %p2045_p1 = scmp.ne.s32.totalorder %s448_s26, %s2044_s1 }
  0x6f   : > { %p2783_p7 = pneg %p2415_p0  ;;  %s2218_s20 = smov [#allocation3]  }
  0x70   : > { %s2049_s3 = sshll.u32 %s2218_s20, 4  ;;  %s2050_s3 = int_to_ptr.vmem [resolvable:$false] %s2049_s3 }
  0x71   : > { %p2047_p4 = pnand %p2045_p1, %p2783_p7  ;;  %s2051_s10 = scalar_lea.vmem %s2050_s3, 128 }
  0x72   : > { %p2052_p6 = scmp.lt.s32.totalorder %s448_s26, %s2050_s3  ;;  %p2053_p13 = scmp.lt.s32.totalorder %s2051_s10, %s2044_s1 }
  0x73   : > { %p2048_p8 = pneg %p2047_p4 }
  0x74   : > { %p2054_p9 = por %p2053_p13, %p2052_p6 }
  0x76   : > { %p2055_p12 = pnand %p2054_p9, %p2048_p8 }
  0x78   : > { %2058 = shalt.err (!%p2055_p12)
}
  0x79   : > { %1787 = dma.hbm_to_vmem [thread:$0]  (!%p2415_p0), %s445_s30, 64, %s448_s26, %s436_s16  }
  0x7a   : > { %s476_s12 = scalar_lea.vmem [#allocation8], %s2411_s15  ;;  %p2784_p5 = pmov %p2783_p7 }
  0x7b   : > { %s483_s29 = sshll.u32 %s476_s12, 4  ;;  %s2219_s17 = smov [#allocation8]   ;;  %s484_s29 = int_to_ptr.vmem [resolvable:$true] %s483_s29 }
  0x7c   : > { %s2072_s21 = scalar_lea.vmem %s484_s29, 64  ;;  %s2077_s25 = sshll.u32 %s2219_s17, 4  ;;  %s2078_s25 = int_to_ptr.vmem [resolvable:$false] %s2077_s25 }
  0x7d   : > { %p2073_p2 = scmp.ne.s32.totalorder %s484_s29, %s2072_s21  ;;  %s2079_s13 = scalar_lea.vmem %s2078_s25, 128 }
  0x7e   : > { %p2080_p7 = scmp.lt.s32.totalorder %s484_s29, %s2078_s25  ;;  %p2081_p4 = scmp.lt.s32.totalorder %s2079_s13, %s2072_s21 }
  0x7f   : > { %p2075_p10 = pnand %p2073_p2, %p2784_p5 }
  0x80   : > { %p2082_p8 = por %p2081_p4, %p2080_p7 }
  0x81   : > { %p2076_p1 = pneg %p2075_p10 }
  0x83   : > { %p2083_p6 = pnand %p2082_p8, %p2076_p1 }
  0x85   : > { %2086 = shalt.err (!%p2083_p6)
}
  0x86   : > { %1793 = dma.hbm_to_vmem [thread:$0]  (!%p2415_p0), %s481_s4, 64, %s484_s29, %s2425_s11  }
  0x87   : > { %492 = sbr.rel (%p2333_p3) target bundleno = 1947 (0x79b), region = 64  ;;  %s2488_s30 = sand.u32 (!%p2333_p3), 1, %s2193_s22  }
  0x88   : > { %s2491_s26 = sshll.u32 (!%p2333_p3), %s2488_s30, 2  ;;  %s495_s19 = scalar_lea.sflag (!%p2333_p3), [#allocation4], %s2488_s30 }
  0x89   : > { %s498_s18 = scalar_lea.vmem (!%p2333_p3), [#allocation3], %s2491_s26 }
  0x8c   : > { %2164 = dma.done.wait (%p2389_p11), %s495_s19, 64  }
  0x8d   : > { %2166 = vsyncadd (%p2389_p11), %s495_s19, 4294967232  ;;  %s503_s4 = sand.u32 1, %s2328_s27   ;;  %s507_s11 = scalar_lea.vmem [#allocation6], %s2491_s26 }
  0x8e   : > { %s504_s5 = scalar_lea.sflag [#allocation7], %s503_s4 }
  0x8f   : > { %2168 = dma.done.wait (%p2389_p11), %s504_s5, 128  }
  0x90   : > { %2170 = vsyncadd (%p2389_p11), %s504_s5, 4294967168  ;;  %s516_s28 = scalar_lea.vmem [#allocation8], %s2491_s26  ;;  %p2785_p3 = scmp.eq.s32.totalorder %s2328_s27, 0 }
  0x92   : > { %2172 = dma.done.wait (%p2785_p3), [#allocation10], 512   ;;  %p2786_p0 = pmov %p2785_p3 }
  0x94   : > { %2174 = vsyncadd (%p2786_p0), [#allocation10], 4294966784  ;;  %p2787_p13 = pmov %p2786_p0 }
  0x95   : > { %p2788_p9 = pmov %p2786_p0 }
  0x96   : > { %2176 = dma.done.wait (%p2787_p13), [#allocation13], 512  }
  0x97   : > { %2178 = vsyncadd (%p2788_p9), [#allocation13], 4294966784  ;;  %v2220_v0 = vmov 0.0   ;;  %vm2221_vm0 = vmmov 0   ;;  %vm613_vm1 = vcmask 261120   ;;  %v1875_v1 = vld [vmem:[#allocation11 + $0x8] sm:$0xff]  }
  0x98   : > { %1673 = vmatprep.subr.bf16.mxu1 %v2220_v0  ;;  %1665 = vmatprep.subr.bf16.mxu0 %v2220_v0  ;;  %v1876_v2 = vld [vmem:[#allocation9 + $0x8] sm:$0xff]   ;;  %v691_v3 = vsel %vm613_vm1, %v1875_v1, 0  ;;  %v1877_v5 = vld [vmem:[#allocation11] sm:$0xff]   ;;  %v1878_v6 = vld [vmem:[#allocation9] sm:$0xff]   ;;  %vm807_vm2 = vcmask 64512   ;;  %s2222_s3 = smov 120  }
  0x99   : > { %1677 = vmatprep.mubr.msk.bf16.mxu1 %vm2221_vm0, %v2220_v0  ;;  %1669 = vmatprep.mubr.msk.bf16.mxu0 %vm2221_vm0, %v2220_v0  ;;  %v621_v4 = vsel %vm613_vm1, %v1876_v2, 0  ;;  %v688_v7 = vsel %vm613_vm1, %v1877_v5, 0  ;;  %v618_v8 = vsel %vm613_vm1, %v1878_v6, 0  ;;  %v590_v9 = vld [vmem:[%s507_s11] sm:$0xf]  ;;  %s2223_s10 = smov 112  }
  0x9a   : > { %1674 = vmatpush3.bf16.xpose.msra.mxu1 %v691_v3  ;;  %1666 = vmatpush3.bf16.xpose.msra.mxu0 %v621_v4  ;;  %v589_v10 = vld [vmem:[%s498_s18] sm:$0xf]  ;;  %v1606_v11 = vld [vmem:[%s2729_s8] ss:$0 sm:$0xff]  ;;  %s2224_s12 = smov 104   ;;  %vm871_vm3 = vcmask 1043456  }
  0x9b   : > { %1675 = vmatprep.subr.bf16.mxu1 %v2220_v0  ;;  %1667 = vmatprep.subr.bf16.mxu0 %v2220_v0  ;;  %v1602_v12 = vld [vmem:[%s2728_s7] ss:$0 sm:$0xff]  ;;  %v1879_v27 = vld [vmem:[#allocation12 + $0x8] sm:$0xff]   ;;  %v591_v31 = vld [vmem:[%s516_s28] sm:$0xf]  ;;  %s1601_s17 = sshll.u32 %s2488_s30, 4 }
  0x9c   : > { %v761_v28 = vsel %vm613_vm1, %v1879_v27, 0  ;;  %v1880_v29 = vld [vmem:[#allocation12] sm:$0xff]   ;;  %vm866_vm4 = vcmask 60416   ;;  %s2583_s25 = scalar_lea.vmem [#allocation16], %s1601_s17  ;;  %s2225_s13 = smov 8   ;;  %vm1035_vm5 = vcmask 130112  }
  0x9d   : > { %v758_v30 = vsel %vm613_vm1, %v1880_v29, 0  ;;  %v1610_v42 = vld [vmem:[%s2730_s9] ss:$0 sm:$0xff]  ;;  %s2226_s16 = smov 16   ;;  %s2227_s15 = smov 24   ;;  %vm1153_vm6 = vcmask 195712  }
  0x9e   : > { %s2789_s26 = sld [smem:[#allocation28_spill]]  ;;  %vm1271_vm7 = vcmask 261312   ;;  %s1636_s19 = sshll.u32 %s2201_s24, 8 }
  0x9f   : > { %s1380_s18 = sshll.u32 %s2583_s25, 4  ;;  %s2790_s11 = sld [smem:[#allocation37_spill]]  ;;  %s2639_s18 = int_to_ptr.vmem [resolvable:$true] %s1380_s18 }
  0xa0   : > { %s1352_s27 = scalar_lea.sflag [#allocation17], %s2488_s30  ;;  %s2087_s14 = scalar_lea.vmem %s2639_s18, 256 }
  0xa1   : > { %p2088_p11 = scmp.ne.s32.totalorder %s2639_s18, %s2087_s14  ;;  %s2228_s1 = smov [#allocation16]  }
  0xa2   : > { %1676 = vmatpush3.bf16.xpose.msra.mxu1 %v688_v7  ;;  %1668 = vmatpush3.bf16.xpose.msra.mxu0 %v618_v8  ;;  %s2091_s20 = sshll.u32 %s2228_s1, 4  ;;  %s2092_s20 = int_to_ptr.vmem [resolvable:$false] %s2091_s20 }
  0xa3   : > { %1689 = vmatprep.subr.bf16.mxu1 %v2220_v0  ;;  %1681 = vmatprep.subr.bf16.mxu0 %v2220_v0  ;;  %p2094_p10 = scmp.lt.s32.totalorder %s2639_s18, %s2092_s20 }
  0xa4   : > { %p2791_p12 = scmp.ne.s32.totalorder %s2789_s26, 0 }
  0xa5   : > { %s2637_s28 = scalar_lea.hbm %s2790_s11, %s1636_s19 }
  0xa6   : > { %p2089_p2 = pnand %p2088_p11, %p2791_p12 }
  0xa8   : > { %p2090_p5 = pneg %p2089_p2 }
  0xa9   : > { %1678 = vmatmul.mubr.msk.bf16.vlgmr.msra.gmra.mxu1 %vm613_vm1, %v590_v9  ;;  %1670 = vmatmul.mubr.msk.bf16.vlgmr.msra.gmra.mxu0 %vm613_vm1, %v589_v10 }
  0xaa   : > { %1691 = vmatprep.mubr.msk.bf16.mxu1 %vm2221_vm0, %v2220_v0  ;;  %1685 = vmatprep.mubr.msk.bf16.mxu0 %vm2221_vm0, %v2220_v0 }
  0xab   : > { %1682 = vmatpush3.bf16.xpose.msra.mxu0 %v761_v28 }
  0xac   : > { %1683 = vmatprep.subr.bf16.mxu0 %v2220_v0 }
  0xb3   : > { %1684 = vmatpush3.bf16.xpose.msra.mxu0 %v758_v30 }
  0xb4   : > { %1713 = vmatprep.subr.bf16.mxu0 %v2220_v0 }
  0xba   : > { %1686 = vmatmul.mubr.msk.bf16.vlgmr.msra.gmra.mxu0 %vm613_vm1, %v591_v31 }
  0xbb   : > { %1715 = vmatprep.mubr.msk.bf16.mxu0 %vm2221_vm0, %v2220_v0 }
 0x169   : > { %v727_v13 = vpop.f32.mrf.mxu1  ;;  %v657_v15 = vpop.f32.mrf.mxu0 }
 0x16a   : > { %v728_v14 = vadd.f32 %v1606_v11, %v727_v13  ;;  %v658_v16 = vadd.f32 %v1602_v12, %v657_v15 }
 0x16b   : > { %v1679_v17 = vpop.f32.mrf.mxu1  ;;  %v1671_v19 = vpop.f32.mrf.mxu0 }
 0x16c   : > { %v805_v18 = vpack.c.bf16 %v728_v14, %v728_v14  ;;  %v803_v20 = vmul.f32 0.35355338, %v658_v16 }
 0x16d   : > { %v730_v21 = vpop.f32.mrf.mxu1  ;;  %v660_v22 = vpop.f32.mrf.mxu0 }
 0x16e   : > { %920 = vrot.lane.b32.xlu1 %v805_v18, %s2222_s3  ;;  %v812_v23 = vsel %vm807_vm2, %v805_v18, 0  ;;  %v804_v24 = vpack.c.bf16 %v803_v20, %v803_v20 }
 0x16f   : > { %v1680_v25 = vpop.f32.mrf.mxu1  ;;  %1690 = vmatpush3.bf16.xpose.msra.mxu1 %v812_v23  ;;  %v1672_v26 = vpop.f32.mrf.mxu0 }
 0x170   : > { %1695 = vmatprep.subr.bf16.mxu1 %v2220_v0 }
 0x172   : > { %917 = vrot.lane.b32.xlu1 %v804_v24, %s2222_s3 }
 0x176   : > { %1037 = vrot.lane.b32.xlu1 %v804_v24, %s2223_s10  ;;  %1692 = vmatmul.mubr.msk.bf16.vlgmr.msra.gmra.mxu1 %vm807_vm2, %v804_v24 }
 0x177   : > { %1697 = vmatprep.mubr.msk.bf16.mxu1 %vm2221_vm0, %v2220_v0 }
 0x17a   : > { %1157 = vrot.lane.b32.xlu1 %v805_v18, %s2224_s12  ;;  %v797_v43 = vpop.f32.mrf.mxu0 }
 0x17b   : > { %v798_v44 = vadd.f32 %v1610_v42, %v797_v43 }
 0x17c   : > { %v1687_v45 = vpop.f32.mrf.mxu0 }
 0x17d   : > { %v2568_v46 = vpack.c.bf16 %v798_v44, %v798_v44 }
 0x17e   : > { %1155 = vrot.lane.b32.xlu1 %v804_v24, %s2224_s12  ;;  %v800_v47 = vpop.f32.mrf.mxu0 }
 0x17f   : > { %v873_v49 = vsel %vm871_vm3, %v2568_v46, 0 }
 0x180   : > { %v1688_v48 = vpop.f32.mrf.mxu0  ;;  %1696 = vmatpush3.bf16.msra.mxu1 %v873_v49 }
 0x181   : > { %1701 = vmatprep.subr.bf16.mxu1 %v2220_v0 }
 0x1e0   : > { %v921_v50 = vpop.permute.xlu1 %920 }
 0x1e1   : > { %v926_v61 = vsel %vm807_vm2, %v921_v50, 0 }
 0x1e4   : > { %v918_v51 = vpop.permute.xlu1 %917 }
 0x1e8   : > { %v1038_v53 = vpop.permute.xlu1 %1037 }
 0x1ec   : > { %v1158_v56 = vpop.permute.xlu1 %1157 }
 0x1ed   : > { %v1163_v57 = vsel %vm807_vm2, %v1158_v56, 0 }
 0x1f0   : > { %v1156_v62 = vpop.permute.xlu1 %1155 }
 0x236   : > { %v848_v32 = vpop.f32.mrf.mxu1 }
 0x237   : > { %v854_v33 = vsel %vm807_vm2, %v848_v32, -inf }
 0x238   : > { %855 = vmax.xlane.f32.xlu0 %v854_v33  ;;  %v1693_v34 = vpop.f32.mrf.mxu1 }
 0x23a   : > { %v851_v35 = vpop.f32.mrf.mxu1 }
 0x23c   : > { %v1694_v36 = vpop.f32.mrf.mxu1 }
 0x2c1   : > { %v856_v37 = vpop.xlane.xlu0 %855 }
 0x2c2   : > { %v857_v38 = vsub.f32 %v848_v32, %v856_v37 }
 0x2c4   : > { %v858_v39 = vmul.f32 1.442695, %v857_v38 }
 0x2c6   : > { %1883 = vpow2.f32 %v858_v39 }
 0x2d3   : > { %v1884_v40 = vpop.eup %1883 }
 0x2d4   : > { %v860_v41 = vsel %vm807_vm2, %v1884_v40, 0.0 }
 0x2d5   : > { %861 = vadd.xlane.f32.xlu0 %v860_v41 }
 0x2eb   : > { %1039 = vrot.lane.b32.xlu0 %v805_v18, %s2223_s10 }
 0x35e   : > { %v862_v52 = vpop.xlane.xlu0 %861 }
 0x35f   : > { %1885 = vrcp.f32 %v862_v52  ;;  %v1881_v52 = vld [vmem:[#allocation14 + $0x8] sm:$0xff]  }
 0x362   : > { %v1040_v54 = vpop.permute.xlu0 %1039 }
 0x363   : > { %v1045_v55 = vsel %vm807_vm2, %v1040_v54, 0 }
 0x364   : > { %1714 = vmatpush3.bf16.xpose.msra.mxu0 %v1045_v55 }
 0x365   : > { %1725 = vmatprep.subr.bf16.mxu0 %v2220_v0 }
 0x36b   : > { %1716 = vmatmul.mubr.msk.bf16.vlgmr.msra.gmra.mxu0 %vm807_vm2, %v1038_v53  ;;  %v1303_v53 = vsel %vm613_vm1, %v1881_v52, 0 }
 0x36c   : > { %v1886_v58 = vpop.eup %1885  ;;  %1726 = vmatpush3.bf16.xpose.msra.mxu0 %v1163_v57  ;;  %1727 = vmatprep.mubr.msk.bf16.mxu0 %vm2221_vm0, %v2220_v0  ;;  %v1882_v57 = vld [vmem:[#allocation14] sm:$0xff]  }
 0x36d   : > { %v864_v59 = vmul.f32 %v1886_v58, %v1884_v40  ;;  %1737 = vmatprep.subr.bf16.mxu0 %v2220_v0 }
 0x36f   : > { %v865_v60 = vpack.c.bf16 %v864_v59, %v864_v59  ;;  %v1300_v59 = vsel %vm613_vm1, %v1882_v57, 0 }
 0x371   : > { %867 = vst.msk [vmem:[%s2583_s25] sm:$0xf] %vm866_vm4, %v865_v60  ;;  %1698 = vmatmul.mubr.msk.bf16.vlgmr.msra.gmra.mxu1 %vm807_vm2, %v865_v60 }
 0x372   : > { %1702 = vmatpush3.bf16.xpose.msra.mxu1 %v926_v61  ;;  %1703 = vmatprep.mubr.msk.bf16.mxu1 %vm2221_vm0, %v2220_v0 }
 0x373   : > { %1728 = vmatmul.mubr.msk.bf16.vlgmr.msra.gmra.mxu0 %vm807_vm2, %v1156_v62  ;;  %1707 = vmatprep.subr.bf16.mxu1 %v2220_v0 }
 0x374   : > { %1741 = vmatprep.mubr.msk.bf16.mxu0 %vm2221_vm0, %v2220_v0  ;;  %1738 = vmatpush3.bf16.xpose.msra.mxu0 %v1303_v53 }
 0x375   : > { %1739 = vmatprep.subr.bf16.mxu0 %v2220_v0 }
 0x379   : > { %1704 = vmatmul.mubr.msk.bf16.vlgmr.msra.gmra.mxu1 %vm807_vm2, %v918_v51 }
 0x37a   : > { %1709 = vmatprep.mubr.msk.bf16.mxu1 %vm2221_vm0, %v2220_v0 }
 0x37c   : > { %1740 = vmatpush3.bf16.xpose.msra.mxu0 %v1300_v59 }
 0x42b   : > { %v1081_v63 = vpop.f32.mrf.mxu0 }
 0x42c   : > { %v1087_v1 = vsel %vm807_vm2, %v1081_v63, -inf }
 0x42d   : > { %1088 = vmax.xlane.f32.xlu0 %v1087_v1  ;;  %v1717_v2 = vpop.f32.mrf.mxu0 }
 0x42f   : > { %v1084_v3 = vpop.f32.mrf.mxu0 }
 0x431   : > { %v909_v4 = vpop.f32.mrf.mxu1  ;;  %v1718_v5 = vpop.f32.mrf.mxu0 }
 0x432   : > { %915 = vst.msk [vmem:[#allocation2] sm:$0xff] %vm807_vm2, %v909_v4 }
 0x433   : > { %v1699_v6 = vpop.f32.mrf.mxu1  ;;  %v1199_v7 = vpop.f32.mrf.mxu0 }
 0x434   : > { %v1205_v17 = vsel %vm807_vm2, %v1199_v7, -inf }
 0x435   : > { %v912_v8 = vpop.f32.mrf.mxu1  ;;  %v1729_v9 = vpop.f32.mrf.mxu0 }
 0x437   : > { %v1700_v10 = vpop.f32.mrf.mxu1  ;;  %v1202_v11 = vpop.f32.mrf.mxu0 }
 0x439   : > { %v962_v12 = vpop.f32.mrf.mxu1  ;;  %v1730_v13 = vpop.f32.mrf.mxu0 }
 0x43a   : > { %v968_v14 = vsel %vm807_vm2, %v962_v12, -inf }
 0x43b   : > { %969 = vmax.xlane.f32.xlu1 %v968_v14  ;;  %v1705_v15 = vpop.f32.mrf.mxu1 }
 0x43d   : > { %v965_v16 = vpop.f32.mrf.mxu1 }
 0x43f   : > { %v1706_v18 = vpop.f32.mrf.mxu1  ;;  %1206 = vmax.xlane.f32.xlu1 %v1205_v17 }
 0x4b6   : > { %v1089_v19 = vpop.xlane.xlu0 %1088 }
 0x4b7   : > { %v1090_v20 = vsub.f32 %v1081_v63, %v1089_v19 }
 0x4b9   : > { %v1091_v21 = vmul.f32 1.442695, %v1090_v20 }
 0x4bb   : > { %1887 = vpow2.f32 %v1091_v21 }
 0x4c4   : > { %v970_v22 = vpop.xlane.xlu1 %969 }
 0x4c5   : > { %v971_v23 = vsub.f32 %v962_v12, %v970_v22 }
 0x4c7   : > { %v972_v28 = vmul.f32 1.442695, %v971_v23 }
 0x4c8   : > { %v1888_v24 = vpop.eup %1887  ;;  %v1207_v25 = vpop.xlane.xlu1 %1206 }
 0x4c9   : > { %v1208_v26 = vsub.f32 %v1199_v7, %v1207_v25  ;;  %v1093_v27 = vsel %vm807_vm2, %v1888_v24, 0.0 }
 0x4ca   : > { %1094 = vadd.xlane.f32.xlu0 %v1093_v27 }
 0x4cb   : > { %v1209_v29 = vmul.f32 1.442695, %v1208_v26 }
 0x4cd   : > { %1889 = vpow2.f32 %v1209_v29 }
 0x4ce   : > { %1891 = vpow2.f32 %v972_v28 }
 0x4da   : > { %v1890_v30 = vpop.eup %1889 }
 0x4db   : > { %v1211_v31 = vsel %vm807_vm2, %v1890_v30, 0.0  ;;  %v1892_v32 = vpop.eup %1891 }
 0x4dc   : > { %1212 = vadd.xlane.f32.xlu1 %v1211_v31  ;;  %v974_v33 = vsel %vm807_vm2, %v1892_v32, 0.0 }
 0x4e0   : > { %983 = vrot.lane.b32.xlu0 %v2568_v46, %s2222_s3  ;;  %975 = vadd.xlane.f32.xlu1 %v974_v33  ;;  %s2093_s3 = scalar_lea.vmem %s2092_s20, 512 }
 0x4e1   : > { %p2095_p1 = scmp.lt.s32.totalorder %s2093_s3, %s2087_s14 }
 0x4e3   : > { %p2096_p7 = por %p2095_p1, %p2094_p10 }
 0x4e5   : > { %p2097_p4 = pnand %p2096_p7, %p2090_p5 }
 0x4f1   : > { %1101 = vrot.lane.b32.xlu1 %v2568_v46, %s2223_s10 }
 0x4f5   : > { %1219 = vrot.lane.b32.xlu1 %v2568_v46, %s2224_s12 }
 0x553   : > { %v1095_v34 = vpop.xlane.xlu0 %1094 }
 0x554   : > { %1893 = vrcp.f32 %v1095_v34 }
 0x557   : > { %v984_v35 = vpop.permute.xlu0 %983 }
 0x558   : > { %v989_v36 = vsel %vm871_vm3, %v984_v35, 0 }
 0x559   : > { %1708 = vmatpush3.bf16.msra.mxu1 %v989_v36 }
 0x55a   : > { %1719 = vmatprep.subr.bf16.mxu1 %v2220_v0 }
 0x561   : > { %v1894_v37 = vpop.eup %1893 }
 0x562   : > { %v1097_v38 = vmul.f32 %v1894_v37, %v1888_v24 }
 0x564   : > { %v1098_v39 = vpack.c.bf16 %v1097_v38, %v1097_v38 }
 0x565   : > { %v1213_v40 = vpop.xlane.xlu1 %1212 }
 0x566   : > { %1895 = vrcp.f32 %v1213_v40  ;;  %1620 = vst.msk [vmem:[%s2583_s25 + $0x8] sm:$0xf] %vm866_vm4, %v1098_v39 }
 0x569   : > { %v976_v41 = vpop.xlane.xlu1 %975 }
 0x56a   : > { %1897 = vrcp.f32 %v976_v41 }
 0x56d   : > { %v1102_v47 = vpop.permute.xlu1 %1101 }
 0x56e   : > { %v1107_v49 = vsel %vm871_vm3, %v1102_v47, 0 }
 0x571   : > { %v1220_v50 = vpop.permute.xlu1 %1219 }
 0x572   : > { %v1225_v51 = vsel %vm871_vm3, %v1220_v50, 0 }
 0x573   : > { %v1896_v42 = vpop.eup %1895 }
 0x574   : > { %v1215_v43 = vmul.f32 %v1896_v42, %v1890_v30 }
 0x576   : > { %v1216_v44 = vpack.c.bf16 %v1215_v43, %v1215_v43 }
 0x577   : > { %v1898_v45 = vpop.eup %1897 }
 0x578   : > { %v978_v46 = vmul.f32 %v1898_v45, %v1892_v32  ;;  %1623 = vst.msk [vmem:[%s2583_s25 + $0xc] sm:$0xf] %vm866_vm4, %v1216_v44 }
 0x57a   : > { %v979_v48 = vpack.c.bf16 %v978_v46, %v978_v46 }
 0x57c   : > { %1617 = vst.msk [vmem:[%s2583_s25 + $0x4] sm:$0xf] %vm866_vm4, %v979_v48  ;;  %1710 = vmatmul.mubr.msk.bf16.vlgmr.msra.gmra.mxu1 %vm807_vm2, %v979_v48 }
 0x57d   : > { %1720 = vmatpush3.bf16.msra.mxu1 %v1107_v49  ;;  %1721 = vmatprep.mubr.msk.bf16.mxu1 %vm2221_vm0, %v2220_v0 }
 0x57e   : > { %1731 = vmatprep.subr.bf16.mxu1 %v2220_v0 }
 0x584   : > { %1722 = vmatmul.mubr.msk.bf16.vlgmr.msra.gmra.mxu1 %vm807_vm2, %v1098_v39 }
 0x585   : > { %1732 = vmatpush3.bf16.msra.mxu1 %v1225_v51  ;;  %1733 = vmatprep.mubr.msk.bf16.mxu1 %vm2221_vm0, %v2220_v0 }
 0x58c   : > { %1734 = vmatmul.mubr.msk.bf16.vlgmr.msra.gmra.mxu1 %vm807_vm2, %v1216_v44 }
 0x63c   : > { %v1025_v54 = vpop.f32.mrf.mxu1 }
 0x63d   : > { %1032 = vrot.lane.b32.xlu0 %v1025_v54, %s2225_s13 }
 0x63e   : > { %v1711_v55 = vpop.f32.mrf.mxu1 }
 0x640   : > { %v1028_v56 = vpop.f32.mrf.mxu1 }
 0x642   : > { %v1712_v58 = vpop.f32.mrf.mxu1 }
 0x644   : > { %v1143_v60 = vpop.f32.mrf.mxu1 }
 0x645   : > { %1150 = vrot.lane.b32.xlu1 %v1143_v60, %s2226_s16 }
 0x646   : > { %v1723_v61 = vpop.f32.mrf.mxu1 }
 0x648   : > { %v1146_v62 = vpop.f32.mrf.mxu1 }
 0x64a   : > { %v1724_v63 = vpop.f32.mrf.mxu1 }
 0x64c   : > { %v1261_v1 = vpop.f32.mrf.mxu1 }
 0x64d   : > { %1268 = vrot.lane.b32.xlu0 %v1261_v1, %s2227_s15 }
 0x64e   : > { %v1735_v0 = vpop.f32.mrf.mxu1 }
 0x650   : > { %v1264_v2 = vpop.f32.mrf.mxu1 }
 0x652   : > { %v1736_v3 = vpop.f32.mrf.mxu1 }
 0x6af   : > { %v1033_v4 = vpop.permute.xlu0 %1032 }
 0x6b0   : > { %1036 = vst.msk [vmem:[#allocation2] sm:$0xff] %vm1035_vm5, %v1033_v4 }
 0x6b7   : > { %v1151_v5 = vpop.permute.xlu1 %1150 }
 0x6b8   : > { %1154 = vst.msk [vmem:[#allocation2] sm:$0xff] %vm1153_vm6, %v1151_v5 }
 0x6bf   : > { %v1269_v6 = vpop.permute.xlu0 %1268 }
 0x6c0   : > { %1272 = vst.msk [vmem:[#allocation2] sm:$0xff] %vm1271_vm7, %v1269_v6 }
 0x6c7   : > { %v1273_v7 = vld [vmem:[#allocation2] sm:$0xff] }
 0x6c8   : > { %v1274_v8 = vpack.c.bf16 %v1273_v7, %v1273_v7 }
 0x6ca   : > { %1742 = vmatmul.mubr.msk.bf16.vlgmr.msra.gmra.mxu0 %vm613_vm1, %v1274_v8 }
 0x6cb   : > { %2100 = shalt.err (!%p2097_p4)
}
 0x6cc   : > { %s2101_s10 = scalar_lea.hbm %s2637_s28, 256  ;;  %s2105_s21 = scalar_lea.hbm %s2790_s11, 512 }
 0x6cd   : > { %p2102_p8 = scmp.ne.s32.totalorder %s2637_s28, %s2101_s10  ;;  %p2106_p0 = scmp.lt.s32.totalorder %s2637_s28, %s2790_s11 }
 0x6ce   : > { %p2107_p13 = scmp.lt.s32.totalorder %s2105_s21, %s2101_s10 }
 0x6cf   : > { %p2103_p6 = pnand %p2102_p8, %p2791_p12 }
 0x6d0   : > { %p2108_p9 = por %p2107_p13, %p2106_p0 }
 0x6d1   : > { %p2104_p3 = pneg %p2103_p6 }
 0x6d3   : > { %p2109_p11 = pnand %p2108_p9, %p2104_p3 }
 0x6d5   : > { %2112 = shalt.err (!%p2109_p11)
}
 0x6d6   : > { %s2229_s13 = smov 64   ;;  %s2230_s16 = smov 4  }
 0x6d7   : > { %1768 = dma.vmem_to_hbm [thread:$0]  (%p2791_p12), %s2639_s18, 256, %s2637_s28, %s1352_s27, %s2229_s13, %s2229_s13, %s2230_s16  }
 0x6d8   : > { %s1600_s15 = sshll.u32 %s2488_s30, 3  ;;  %s2792_s5 = sld [smem:[#allocation35_spill]] }
 0x6d9   : > { %s1631_s14 = sshll.u32 %s2201_s24, 7  ;;  %s580_s1 = scalar_lea.vmem [#allocation15], %s1600_s15 }
 0x6da   : > { %s1366_s20 = sshll.u32 %s580_s1, 4  ;;  %s2793_s12 = sld [smem:[#allocation36_spill]]  ;;  %s2674_s20 = int_to_ptr.vmem [resolvable:$true] %s1366_s20 }
 0x6db   : > { %s1347_s18 = scalar_lea.sflag [#allocation5], %s2488_s30  ;;  %s2113_s24 = scalar_lea.vmem %s2674_s20, 128 }
 0x6dc   : > { %p2114_p2 = scmp.ne.s32.totalorder %s2674_s20, %s2113_s24  ;;  %s2231_s28 = smov [#allocation15]  }
 0x6dd   : > { %s2117_s27 = sshll.u32 %s2231_s28, 4  ;;  %s2118_s27 = int_to_ptr.vmem [resolvable:$false] %s2117_s27 }
 0x6de   : > { %v1625_v9 = vld [vmem:[%s2792_s5] ss:$0 sm:$0xff]  ;;  %p2115_p5 = pnand %p2114_p2, %p2791_p12  ;;  %s2119_s21 = scalar_lea.vmem %s2118_s27, 256 }
 0x6df   : > { %p2120_p1 = scmp.lt.s32.totalorder %s2674_s20, %s2118_s27  ;;  %p2121_p7 = scmp.lt.s32.totalorder %s2119_s21, %s2113_s24 }
 0x6e0   : > { %s2672_s29 = scalar_lea.hbm %s2793_s12, %s1631_s14  ;;  %p2116_p10 = pneg %p2115_p5 }
 0x6e1   : > { %p2122_p4 = por %p2121_p7, %p2120_p1 }
 0x6e3   : > { %p2123_p8 = pnand %p2122_p4, %p2116_p10 }
 0x78a   : > { %v1339_v10 = vpop.f32.mrf.mxu0 }
 0x78b   : > { %v1340_v11 = vadd.f32 %v1625_v9, %v1339_v10 }
 0x78c   : > { %v1743_v12 = vpop.f32.mrf.mxu0 }
 0x78d   : > { %1345 = vst.msk [vmem:[%s580_s1] sm:$0xff] %vm613_vm1, %v1340_v11 }
 0x78e   : > { %v1342_v13 = vpop.f32.mrf.mxu0 }
 0x78f   : > { %2126 = shalt.err (!%p2123_p8)
}
 0x790   : > { %s2127_s17 = scalar_lea.hbm %s2672_s29, 128  ;;  %s2131_s13 = scalar_lea.hbm %s2793_s12, 256 }
 0x791   : > { %p2128_p6 = scmp.ne.s32.totalorder %s2672_s29, %s2127_s17  ;;  %p2132_p13 = scmp.lt.s32.totalorder %s2672_s29, %s2793_s12 }
 0x792   : > { %p2133_p9 = scmp.lt.s32.totalorder %s2131_s13, %s2127_s17 }
 0x793   : > { %p2129_p3 = pnand %p2128_p6, %p2791_p12 }
 0x794   : > { %p2134_p11 = por %p2133_p9, %p2132_p13 }
 0x795   : > { %p2130_p0 = pneg %p2129_p3 }
 0x797   : > { %p2135_p2 = pnand %p2134_p11, %p2130_p0 }
 0x799   : > { %2138 = shalt.err (!%p2135_p2)
}
 0x79a   : > { %1767 = dma.vmem_to_hbm [thread:$0]  (%p2791_p12), %s2674_s20, 128, %s2672_s29, %s1347_s18   ;;  %v1744_v14 = vpop.f32.mrf.mxu0 }
 0x79b PF: > { %s2794_s19 = sld [smem:[#allocation24_spill]] }
 0x79c   : > { %s2795_s4 = sld [smem:[#allocation30_spill]] }
 0x79d   : > { %s2796_s5 = sld [smem:[#allocation26_spill]] }
 0x7a1   : > { %s1395_s14 = sand.u32 1, %s2794_s19  }
 0x7a2   : > { %p2797_p5 = scmp.ne.s32.totalorder %s2795_s4, 0  ;;  %s1396_s1 = scalar_lea.sflag [#allocation5], %s1395_s14 }
 0x7a3   : > { %p2798_p10 = scmp.ge.s32.totalorder %s2796_s5, 2 }
 0x7a5   : > { %p1795_p1 = pnand %p2798_p10, %p2797_p5 }
 0x7a7   : > { %p1796_p7 = pneg %p1795_p1 }
 0x7a9   : > { %2180 = dma.done.wait (%p1796_p7), %s1396_s1, 128  }
 0x7aa   : > { %2182 = vsyncadd (%p1796_p7), %s1396_s1, 4294967168  ;;  %s1405_s3 = scalar_lea.sflag [#allocation17], %s1395_s14 }
 0x7ab   : > { %2184 = dma.done.wait (%p1796_p7), %s1405_s3, 256  }
 0x7ac   : > { %2186 = vsyncadd (%p1796_p7), %s1405_s3, 4294967040  ;;  %s37_s26 = sadd.s32 1, %s2796_s5   ;;  %s2799_s20 = sld [smem:[#allocation29_spill]] }
 0x7ad   : > { %p34_p4 = scmp.ge.s32.totalorder %s37_s26, 4   ;;  %s2800_s24 = sld [smem:[#allocation25_spill]] }
 0x7ae   : > { %s2801_s25 = sld [smem:[#allocation27_spill]]  ;;  %s2802_s21 = smov %s2193_s22 }
 0x7af   : > { %s2803_s22 = smov %s2197_s23  ;;  %36 = sbr.rel (!%p34_p4) target bundleno = 20 (0x14), region = 169 }
 0x7b2   : > { %s2804_s23 = smov %s2799_s20 }
 0x7b4   :  { %1410 = vsyncpa [#allocation4], 1 }
 0x7b5   :  { %1412 = vsyncpa [#allocation4 + $0x1], 1 }
 0x7b6   :  { %1413 = vsyncpa [#allocation7], 1 }
 0x7b7   :  { %1415 = vsyncpa [#allocation7 + $0x1], 1 }
 0x7b8   :  { %1416 = vsyncpa [#allocation10], 1 }
 0x7b9   :  { %1417 = vsyncpa [#allocation13], 1 }
 0x7ba   :  { %1418 = vsyncpa [#allocation5], 1 }
 0x7bb   :  { %1420 = vsyncpa [#allocation5 + $0x1], 1 }
 0x7bc   :  { %1421 = vsyncpa [#allocation17], 1 }
 0x7bd   :  { %1423 = vsyncpa [#allocation17 + $0x1], 1 }

</bundles_post_ra>
